<compile_context>
chip_gen: v6e
topology: v6e:2x2x1
jax: 0.10.0
libtpu: 0.0.40
codegen_flags: <defaults>
</compile_context>

<pallas_src>
import functools

import jax
import jax.numpy as jnp
from jax import lax
from jax.experimental import pallas as pl
from jax.experimental.pallas import tpu as pltpu


# ----------------------------------------------------------------------------
# Fused multi-round attention kernel.  One grid step == one batch element,
# all rounds executed in-kernel.
# ----------------------------------------------------------------------------
def _attn_module_kernel(seq1_ref, seq2_ref, wq0_ref, wkv0_ref, wqkv1_ref, bqkv1_ref,
                        ctx_ref, scores_ref, *, num_heads, num_rounds, attn_dim, scale):
    # Per grid step (one batch element):
    #   seq1_ref, seq2_ref : (N, bert_dim)
    #   wq0_ref            : (bert_dim, attn_dim)              round-0 Q weights (no bias)
    #   wkv0_ref           : (bert_dim, 2*attn_dim)            round-0 [K|V] weights (no bias)
    #   wqkv1_ref          : (max(R-1,1), attn_dim, 3*attn_dim) fused later-round [Wq|Wk|Wv]
    #   bqkv1_ref          : (max(R-1,1), 1, 3*attn_dim)        fused later-round [bq|bk|bv]
    #   ctx_ref            : (N, attn_dim)                     final-round context
    #   scores_ref         : (N, H*N)                          final-round probs, heads on lanes
    N = seq1_ref.shape[0]
    H = num_heads
    split = attn_dim // H

    def split_heads(x):                                   # (N, H*split) -> (H, N, split)
        return jnp.stack([x[:, h * split:(h + 1) * split] for h in range(H)], axis=0)

    def attention(q, k, v):
        qh, kh, vh = split_heads(q), split_heads(k), split_heads(v)
        # Reference order: scores = softmax(tanh(Q K^T) / sqrt(bert_dim)).
        sc = jnp.einsum("hqd,hkd->hqk", qh, kh, preferred_element_type=jnp.float32)
        sc = jnp.tanh(sc) * scale
        # |sc| <= scale < 1, so the usual max-subtraction is unnecessary.
        e = jnp.exp(sc)
        p = e / jnp.sum(e, axis=-1, keepdims=True)        # exact softmax (p is an output)
        ctxh = jnp.einsum("hqk,hkd->hqd", p, vh, preferred_element_type=jnp.float32)
        ctx = jnp.concatenate([ctxh[h] for h in range(H)], axis=-1)    # (N, attn_dim)
        probs = jnp.concatenate([p[h] for h in range(H)], axis=-1)     # (N, H*N): one store
        return ctx, probs

    # ---- round 0: Q from sequence1, fused [K|V] from sequence2 (bias-free) ----
    q0 = jnp.dot(seq1_ref[...], wq0_ref[...], preferred_element_type=jnp.float32)
    kv0 = jnp.dot(seq2_ref[...], wkv0_ref[...], preferred_element_type=jnp.float32)
    ctx, probs = attention(q0, kv0[:, :attn_dim], kv0[:, attn_dim:])

    # ---- rounds 1..R-1: sequence1 == sequence2 == ctx -> ONE fused QKV matmul ----
    if num_rounds > 1:
        def body(r, carry):
            ctx, _ = carry
            qkv = (jnp.dot(ctx, wqkv1_ref[r], preferred_element_type=jnp.float32)
                   + bqkv1_ref[r])
            return attention(qkv[:, :attn_dim],
                             qkv[:, attn_dim:2 * attn_dim],
                             qkv[:, 2 * attn_dim:])

        ctx, probs = lax.fori_loop(0, num_rounds - 1, body, (ctx, probs), unroll=True)

    ctx_ref[...] = ctx
    scores_ref[...] = probs


# ----------------------------------------------------------------------------
# AttentionModule.forward (all rounds, one pallas_call).
# ----------------------------------------------------------------------------
def attention_module_forward(params, opt, sequence1, sequence2, aspect_mask=None):
    # TODO(synk): nn.Dropout(p=opt.gcn_dropout) treated as identity (eval mode);
    # aspect_mask only feeds `aspect_out`, which the module discards, so it is ignored.
    num_rounds = opt["c_c_Attention_num"]
    num_heads = opt["c_c_heads"]
    bert_dim = opt["bert_dim"]
    attn_dim = opt["attention_dim"]
    B, N, _ = sequence1.shape
    scale = 1.0 / (bert_dim ** 0.5)
    assert num_rounds >= 1 and attn_dim % num_heads == 0

    # Round 0 (bias-free, bert_dim -> attention_dim): Q separate, [K|V] fused column-wise.
    wq0 = params["w_b_q"][0]
    wkv0 = jnp.concatenate([params["w_b_k"][0], params["w_b_v"][0]], axis=1)

    # Rounds r>0 (biased, attention_dim -> attention_dim): [Q|K|V] fused column-wise and
    # stacked over rounds; the whole (tiny) tensor stays resident in VMEM.
    if num_rounds > 1:
        wqkv1 = jnp.stack([
            jnp.concatenate([params["w_b_q1"][r][0], params["w_b_k1"][r][0],
                             params["w_b_v1"][r][0]], axis=1)
            for r in range(num_rounds - 1)])
        bqkv1 = jnp.stack([
            jnp.concatenate([params["w_b_q1"][r][1], params["w_b_k1"][r][1],
                             params["w_b_v1"][r][1]], axis=1)
            for r in range(num_rounds - 1)])
    else:
        wqkv1 = jnp.zeros((1, attn_dim, 3 * attn_dim), jnp.float32)   # never read
        bqkv1 = jnp.zeros((1, 1, 3 * attn_dim), jnp.float32)
    r1 = wqkv1.shape[0]

    kernel = functools.partial(_attn_module_kernel, num_heads=num_heads,
                               num_rounds=num_rounds, attn_dim=attn_dim, scale=scale)

    ctx, scores_flat = pl.pallas_call(
        kernel,
        out_shape=(
            jax.ShapeDtypeStruct((B, N, attn_dim), jnp.float32),
            jax.ShapeDtypeStruct((B, N, num_heads * N), jnp.float32),
        ),
        grid=(B,),
        in_specs=[
            pl.BlockSpec((None, N, bert_dim), lambda b: (b, 0, 0)),            # sequence1[b]
            pl.BlockSpec((None, N, bert_dim), lambda b: (b, 0, 0)),            # sequence2[b]
            pl.BlockSpec((bert_dim, attn_dim), lambda b: (0, 0)),              # Wq   (round 0)
            pl.BlockSpec((bert_dim, 2 * attn_dim), lambda b: (0, 0)),          # Wk|Wv(round 0)
            pl.BlockSpec((r1, attn_dim, 3 * attn_dim), lambda b: (0, 0, 0)),   # Wq|Wk|Wv (r>0)
            pl.BlockSpec((r1, 1, 3 * attn_dim), lambda b: (0, 0, 0)),          # bq|bk|bv (r>0)
        ],
        out_specs=(
            pl.BlockSpec((None, N, attn_dim), lambda b: (b, 0, 0)),            # ctx[b]
            pl.BlockSpec((None, N, num_heads * N), lambda b: (b, 0, 0)),       # probs[b]
        ),
        compiler_params=pltpu.CompilerParams(dimension_semantics=("parallel",)),
    )(sequence1, sequence2, wq0, wkv0, wqkv1, bqkv1)

    # Layout plumbing only (outside the kernel): (B, N, H*N) -> (H, B, N, N),
    # matching torch.stack(torch.split(scores, split, dim=2), dim=0).
    scores = scores_flat.reshape(B, N, num_heads, N).transpose(2, 0, 1, 3)

    # sequence_list1[-1] == sequence_list2[-1] == final context; last round's scores.
    return ctx, ctx, scores


# ----------------------------------------------------------------------------
# Parameter construction (deterministic, torch-Linear-style uniform init).
# ----------------------------------------------------------------------------
def init_params(key, bert_dim, attention_dim, layer_num):
    def linear(key, fan_in, fan_out, bias):
        bound = 1.0 / (fan_in ** 0.5)
        kw, kb = jax.random.split(key)
        # stored as (fan_in, fan_out) so the kernel computes x @ W directly
        w = jax.random.uniform(kw, (fan_in, fan_out), jnp.float32, -bound, bound)
        if bias:
            b = jax.random.uniform(kb, (1, fan_out), jnp.float32, -bound, bound)
        else:
            b = jnp.zeros((1, fan_out), jnp.float32)
        return w, b

    keys = jax.random.split(key, 3 + 3 * max(layer_num - 1, 0))
    params = {
        "w_b_q": linear(keys[0], bert_dim, attention_dim, bias=False),
        "w_b_k": linear(keys[1], bert_dim, attention_dim, bias=False),
        "w_b_v": linear(keys[2], bert_dim, attention_dim, bias=False),
        "w_b_q1": [], "w_b_k1": [], "w_b_v1": [],
    }
    for l in range(layer_num - 1):
        params["w_b_q1"].append(linear(keys[3 + 3 * l + 0], attention_dim, attention_dim, bias=True))
        params["w_b_k1"].append(linear(keys[3 + 3 * l + 1], attention_dim, attention_dim, bias=True))
        params["w_b_v1"].append(linear(keys[3 + 3 * l + 2], attention_dim, attention_dim, bias=True))
    return params


if __name__ == "__main__":
    # Small synthetic config consistent with the module.
    opt = dict(
        bert_dim=32,
        attention_dim=32,
        c_c_heads=4,
        c_c_Attention_num=2,
        gcn_dropout=0.1,
    )
    layer_num = 2          # must be >= c_c_Attention_num
    B, N = 2, 8            # batch, sequence length

    key = jax.random.PRNGKey(0)
    k_param, k_s1, k_s2 = jax.random.split(key, 3)

    params = init_params(k_param, opt["bert_dim"], opt["attention_dim"], layer_num)
    sequence1 = jax.random.normal(k_s1, (B, N, opt["bert_dim"]), jnp.float32)
    sequence2 = jax.random.normal(k_s2, (B, N, opt["bert_dim"]), jnp.float32)

    out1, out2, scores = attention_module_forward(params, opt, sequence1, sequence2)
    jax.block_until_ready((out1, out2, scores))

    assert out1.shape == (B, N, opt["attention_dim"])
    assert out2.shape == (B, N, opt["attention_dim"])
    assert scores.shape == (opt["c_c_heads"], B, N, N)
    # softmax rows must sum to 1 (exact divide, per review)
    assert bool(jnp.allclose(jnp.sum(scores, axis=-1), 1.0, atol=1e-5))
    assert bool(jnp.all(jnp.isfinite(out1))) and bool(jnp.all(jnp.isfinite(scores)))
    print("KERNEL_OK")
</pallas_src>

<mosaic_0001>
module attributes {stable_mosaic.version = 11 : i64} {
  func.func @_attn_module_kernel(%arg0: i32, %arg1: memref<1x8x32xf32, #tpu.memory_space<vmem>>, %arg2: memref<1x8x32xf32, #tpu.memory_space<vmem>>, %arg3: memref<32x32xf32, #tpu.memory_space<vmem>>, %arg4: memref<32x64xf32, #tpu.memory_space<vmem>>, %arg5: memref<1x32x96xf32, #tpu.memory_space<vmem>>, %arg6: memref<1x1x96xf32, #tpu.memory_space<vmem>>, %arg7: memref<1x8x32xf32, #tpu.memory_space<vmem>>, %arg8: memref<1x8x32xf32, #tpu.memory_space<vmem>>) attributes {dimension_semantics = [#tpu.dimension_semantics<parallel>], iteration_bounds = array<i64: 2>, scalar_prefetch = 0 : i64, scratch_operands = 0 : i64, tpu.core_type = #tpu.core_type<tc>, window_params = [{transform_indices = @transform_0, window_bounds = array<i64: 1, 8, 32>}, {transform_indices = @transform_1, window_bounds = array<i64: 1, 8, 32>}, {pipeline_mode = #tpu.pipeline_mode<synchronous>, transform_indices = @transform_2, window_bounds = array<i64: 32, 32>}, {pipeline_mode = #tpu.pipeline_mode<synchronous>, transform_indices = @transform_3, window_bounds = array<i64: 32, 64>}, {pipeline_mode = #tpu.pipeline_mode<synchronous>, transform_indices = @transform_4, window_bounds = array<i64: 1, 32, 96>}, {pipeline_mode = #tpu.pipeline_mode<synchronous>, transform_indices = @transform_5, window_bounds = array<i64: 1, 1, 96>}, {transform_indices = @transform_6, window_bounds = array<i64: 1, 8, 32>}, {transform_indices = @transform_7, window_bounds = array<i64: 1, 8, 32>}]} {
    %c0 = arith.constant 0 : index
    %c0_0 = arith.constant 0 : index
    %c0_1 = arith.constant 0 : index
    %0 = vector.load %arg1[%c0, %c0_0, %c0_1] : memref<1x8x32xf32, #tpu.memory_space<vmem>>, vector<1x8x32xf32>
    %1 = vector.shape_cast %0 : vector<1x8x32xf32> to vector<8x32xf32>
    %c0_2 = arith.constant 0 : index
    %c0_3 = arith.constant 0 : index
    %2 = vector.load %arg3[%c0_2, %c0_3] : memref<32x32xf32, #tpu.memory_space<vmem>>, vector<32x32xf32>
    %cst = arith.constant dense<0.000000e+00> : vector<8x32xf32>
    %3 = tpu.matmul %1, %2, %cst {dimension_numbers = #tpu.dot_dimension_numbers<[1], [0], [0], [1], [0, 0, 1, 1], [], []>} : vector<8x32xf32>, vector<32x32xf32>, vector<8x32xf32> -> vector<8x32xf32>
    %c0_4 = arith.constant 0 : index
    %c0_5 = arith.constant 0 : index
    %c0_6 = arith.constant 0 : index
    %4 = vector.load %arg2[%c0_4, %c0_5, %c0_6] : memref<1x8x32xf32, #tpu.memory_space<vmem>>, vector<1x8x32xf32>
    %5 = vector.shape_cast %4 : vector<1x8x32xf32> to vector<8x32xf32>
    %c0_7 = arith.constant 0 : index
    %c0_8 = arith.constant 0 : index
    %6 = vector.load %arg4[%c0_7, %c0_8] : memref<32x64xf32, #tpu.memory_space<vmem>>, vector<32x64xf32>
    %cst_9 = arith.constant dense<0.000000e+00> : vector<8x64xf32>
    %7 = tpu.matmul %5, %6, %cst_9 {dimension_numbers = #tpu.dot_dimension_numbers<[1], [0], [0], [1], [0, 0, 1, 1], [], []>} : vector<8x32xf32>, vector<32x64xf32>, vector<8x64xf32> -> vector<8x64xf32>
    %8 = vector.extract_strided_slice %7 {offsets = [0, 0], sizes = [8, 32], strides = [1, 1]} : vector<8x64xf32> to vector<8x32xf32>
    %9 = vector.extract_strided_slice %7 {offsets = [0, 32], sizes = [8, 32], strides = [1, 1]} : vector<8x64xf32> to vector<8x32xf32>
    %10 = vector.extract_strided_slice %3 {offsets = [0, 0], sizes = [8, 8], strides = [1, 1]} : vector<8x32xf32> to vector<8x8xf32>
    %11 = vector.extract_strided_slice %3 {offsets = [0, 8], sizes = [8, 8], strides = [1, 1]} : vector<8x32xf32> to vector<8x8xf32>
    %12 = vector.extract_strided_slice %3 {offsets = [0, 16], sizes = [8, 8], strides = [1, 1]} : vector<8x32xf32> to vector<8x8xf32>
    %13 = vector.extract_strided_slice %3 {offsets = [0, 24], sizes = [8, 8], strides = [1, 1]} : vector<8x32xf32> to vector<8x8xf32>
    %14 = vector.shape_cast %10 : vector<8x8xf32> to vector<1x8x8xf32>
    %15 = vector.shape_cast %11 : vector<8x8xf32> to vector<1x8x8xf32>
    %16 = vector.shape_cast %12 : vector<8x8xf32> to vector<1x8x8xf32>
    %17 = vector.shape_cast %13 : vector<8x8xf32> to vector<1x8x8xf32>
    %18 = tpu.concatenate %14, %15, %16, %17 in 0 : vector<1x8x8xf32>, vector<1x8x8xf32>, vector<1x8x8xf32>, vector<1x8x8xf32> -> vector<4x8x8xf32>
    %19 = vector.extract_strided_slice %8 {offsets = [0, 0], sizes = [8, 8], strides = [1, 1]} : vector<8x32xf32> to vector<8x8xf32>
    %20 = vector.extract_strided_slice %8 {offsets = [0, 8], sizes = [8, 8], strides = [1, 1]} : vector<8x32xf32> to vector<8x8xf32>
    %21 = vector.extract_strided_slice %8 {offsets = [0, 16], sizes = [8, 8], strides = [1, 1]} : vector<8x32xf32> to vector<8x8xf32>
    %22 = vector.extract_strided_slice %8 {offsets = [0, 24], sizes = [8, 8], strides = [1, 1]} : vector<8x32xf32> to vector<8x8xf32>
    %23 = vector.shape_cast %19 : vector<8x8xf32> to vector<1x8x8xf32>
    %24 = vector.shape_cast %20 : vector<8x8xf32> to vector<1x8x8xf32>
    %25 = vector.shape_cast %21 : vector<8x8xf32> to vector<1x8x8xf32>
    %26 = vector.shape_cast %22 : vector<8x8xf32> to vector<1x8x8xf32>
    %27 = tpu.concatenate %23, %24, %25, %26 in 0 : vector<1x8x8xf32>, vector<1x8x8xf32>, vector<1x8x8xf32>, vector<1x8x8xf32> -> vector<4x8x8xf32>
    %28 = vector.extract_strided_slice %9 {offsets = [0, 0], sizes = [8, 8], strides = [1, 1]} : vector<8x32xf32> to vector<8x8xf32>
    %29 = vector.extract_strided_slice %9 {offsets = [0, 8], sizes = [8, 8], strides = [1, 1]} : vector<8x32xf32> to vector<8x8xf32>
    %30 = vector.extract_strided_slice %9 {offsets = [0, 16], sizes = [8, 8], strides = [1, 1]} : vector<8x32xf32> to vector<8x8xf32>
    %31 = vector.extract_strided_slice %9 {offsets = [0, 24], sizes = [8, 8], strides = [1, 1]} : vector<8x32xf32> to vector<8x8xf32>
    %32 = vector.shape_cast %28 : vector<8x8xf32> to vector<1x8x8xf32>
    %33 = vector.shape_cast %29 : vector<8x8xf32> to vector<1x8x8xf32>
    %34 = vector.shape_cast %30 : vector<8x8xf32> to vector<1x8x8xf32>
    %35 = vector.shape_cast %31 : vector<8x8xf32> to vector<1x8x8xf32>
    %36 = tpu.concatenate %32, %33, %34, %35 in 0 : vector<1x8x8xf32>, vector<1x8x8xf32>, vector<1x8x8xf32>, vector<1x8x8xf32> -> vector<4x8x8xf32>
    "tpu.trace_start"() <{level = 10 : i32, message = "hqd,hkd->hqk"}> : () -> ()
    %cst_10 = arith.constant dense<0.000000e+00> : vector<4x8x8xf32>
    %37 = tpu.matmul %18, %27, %cst_10 {dimension_numbers = #tpu.dot_dimension_numbers<[2], [2], [1], [1], [0, 0, 0, 1, 1, 1], [0], [0]>} : vector<4x8x8xf32>, vector<4x8x8xf32>, vector<4x8x8xf32> -> vector<4x8x8xf32>
    "tpu.trace_stop"() : () -> ()
    %38 = math.tanh %37 : vector<4x8x8xf32>
    %cst_11 = arith.constant 0.176776692 : f32
    %39 = vector.broadcast %cst_11 : f32 to vector<4x8x8xf32>
    %40 = arith.mulf %38, %39 : vector<4x8x8xf32>
    %41 = math.exp %40 : vector<4x8x8xf32>
    %cst_12 = arith.constant dense<0.000000e+00> : vector<4x8xf32>
    %42 = vector.multi_reduction <add>, %41, %cst_12 [2] : vector<4x8x8xf32> to vector<4x8xf32>
    %43 = vector.shape_cast %42 : vector<4x8xf32> to vector<4x8x1xf32>
    %44 = vector.broadcast %43 : vector<4x8x1xf32> to vector<4x8x8xf32>
    %45 = arith.divf %41, %44 : vector<4x8x8xf32>
    "tpu.trace_start"() <{level = 10 : i32, message = "hqk,hkd->hqd"}> : () -> ()
    %cst_13 = arith.constant dense<0.000000e+00> : vector<4x8x8xf32>
    %46 = tpu.matmul %45, %36, %cst_13 {dimension_numbers = #tpu.dot_dimension_numbers<[2], [1], [1], [2], [0, 0, 0, 1, 1, 2], [0], [0]>} : vector<4x8x8xf32>, vector<4x8x8xf32>, vector<4x8x8xf32> -> vector<4x8x8xf32>
    "tpu.trace_stop"() : () -> ()
    %47 = vector.extract_strided_slice %46 {offsets = [0, 0, 0], sizes = [1, 8, 8], strides = [1, 1, 1]} : vector<4x8x8xf32> to vector<1x8x8xf32>
    %48 = vector.shape_cast %47 : vector<1x8x8xf32> to vector<8x8xf32>
    %49 = vector.extract_strided_slice %46 {offsets = [1, 0, 0], sizes = [1, 8, 8], strides = [1, 1, 1]} : vector<4x8x8xf32> to vector<1x8x8xf32>
    %50 = vector.shape_cast %49 : vector<1x8x8xf32> to vector<8x8xf32>
    %51 = vector.extract_strided_slice %46 {offsets = [2, 0, 0], sizes = [1, 8, 8], strides = [1, 1, 1]} : vector<4x8x8xf32> to vector<1x8x8xf32>
    %52 = vector.shape_cast %51 : vector<1x8x8xf32> to vector<8x8xf32>
    %53 = vector.extract_strided_slice %46 {offsets = [3, 0, 0], sizes = [1, 8, 8], strides = [1, 1, 1]} : vector<4x8x8xf32> to vector<1x8x8xf32>
    %54 = vector.shape_cast %53 : vector<1x8x8xf32> to vector<8x8xf32>
    %55 = tpu.concatenate %48, %50, %52, %54 in 1 : vector<8x8xf32>, vector<8x8xf32>, vector<8x8xf32>, vector<8x8xf32> -> vector<8x32xf32>
    %56 = vector.extract_strided_slice %45 {offsets = [0, 0, 0], sizes = [1, 8, 8], strides = [1, 1, 1]} : vector<4x8x8xf32> to vector<1x8x8xf32>
    %57 = vector.shape_cast %56 : vector<1x8x8xf32> to vector<8x8xf32>
    %58 = vector.extract_strided_slice %45 {offsets = [1, 0, 0], sizes = [1, 8, 8], strides = [1, 1, 1]} : vector<4x8x8xf32> to vector<1x8x8xf32>
    %59 = vector.shape_cast %58 : vector<1x8x8xf32> to vector<8x8xf32>
    %60 = vector.extract_strided_slice %45 {offsets = [2, 0, 0], sizes = [1, 8, 8], strides = [1, 1, 1]} : vector<4x8x8xf32> to vector<1x8x8xf32>
    %61 = vector.shape_cast %60 : vector<1x8x8xf32> to vector<8x8xf32>
    %62 = vector.extract_strided_slice %45 {offsets = [3, 0, 0], sizes = [1, 8, 8], strides = [1, 1, 1]} : vector<4x8x8xf32> to vector<1x8x8xf32>
    %63 = vector.shape_cast %62 : vector<1x8x8xf32> to vector<8x8xf32>
    %64 = tpu.concatenate %57, %59, %61, %63 in 1 : vector<8x8xf32>, vector<8x8xf32>, vector<8x8xf32>, vector<8x8xf32> -> vector<8x32xf32>
    %c0_i32 = arith.constant 0 : i32
    %65 = arith.index_cast %c0_i32 : i32 to index
    %c0_14 = arith.constant 0 : index
    %c0_15 = arith.constant 0 : index
    %66 = vector.load %arg5[%65, %c0_14, %c0_15] : memref<1x32x96xf32, #tpu.memory_space<vmem>>, vector<1x32x96xf32>
    %67 = vector.shape_cast %66 : vector<1x32x96xf32> to vector<32x96xf32>
    %cst_16 = arith.constant dense<0.000000e+00> : vector<8x96xf32>
    %68 = tpu.matmul %55, %67, %cst_16 {dimension_numbers = #tpu.dot_dimension_numbers<[1], [0], [0], [1], [0, 0, 1, 1], [], []>} : vector<8x32xf32>, vector<32x96xf32>, vector<8x96xf32> -> vector<8x96xf32>
    %69 = arith.index_cast %c0_i32 : i32 to index
    %c0_17 = arith.constant 0 : index
    %c0_18 = arith.constant 0 : index
    %70 = vector.load %arg6[%69, %c0_17, %c0_18] : memref<1x1x96xf32, #tpu.memory_space<vmem>>, vector<1x1x96xf32>
    %71 = vector.shape_cast %70 : vector<1x1x96xf32> to vector<1x96xf32>
    %72 = vector.broadcast %71 : vector<1x96xf32> to vector<8x96xf32>
    %73 = arith.addf %68, %72 : vector<8x96xf32>
    %74 = vector.extract_strided_slice %73 {offsets = [0, 0], sizes = [8, 32], strides = [1, 1]} : vector<8x96xf32> to vector<8x32xf32>
    %75 = vector.extract_strided_slice %73 {offsets = [0, 32], sizes = [8, 32], strides = [1, 1]} : vector<8x96xf32> to vector<8x32xf32>
    %76 = vector.extract_strided_slice %73 {offsets = [0, 64], sizes = [8, 32], strides = [1, 1]} : vector<8x96xf32> to vector<8x32xf32>
    %77 = vector.extract_strided_slice %74 {offsets = [0, 0], sizes = [8, 8], strides = [1, 1]} : vector<8x32xf32> to vector<8x8xf32>
    %78 = vector.extract_strided_slice %74 {offsets = [0, 8], sizes = [8, 8], strides = [1, 1]} : vector<8x32xf32> to vector<8x8xf32>
    %79 = vector.extract_strided_slice %74 {offsets = [0, 16], sizes = [8, 8], strides = [1, 1]} : vector<8x32xf32> to vector<8x8xf32>
    %80 = vector.extract_strided_slice %74 {offsets = [0, 24], sizes = [8, 8], strides = [1, 1]} : vector<8x32xf32> to vector<8x8xf32>
    %81 = vector.shape_cast %77 : vector<8x8xf32> to vector<1x8x8xf32>
    %82 = vector.shape_cast %78 : vector<8x8xf32> to vector<1x8x8xf32>
    %83 = vector.shape_cast %79 : vector<8x8xf32> to vector<1x8x8xf32>
    %84 = vector.shape_cast %80 : vector<8x8xf32> to vector<1x8x8xf32>
    %85 = tpu.concatenate %81, %82, %83, %84 in 0 : vector<1x8x8xf32>, vector<1x8x8xf32>, vector<1x8x8xf32>, vector<1x8x8xf32> -> vector<4x8x8xf32>
    %86 = vector.extract_strided_slice %75 {offsets = [0, 0], sizes = [8, 8], strides = [1, 1]} : vector<8x32xf32> to vector<8x8xf32>
    %87 = vector.extract_strided_slice %75 {offsets = [0, 8], sizes = [8, 8], strides = [1, 1]} : vector<8x32xf32> to vector<8x8xf32>
    %88 = vector.extract_strided_slice %75 {offsets = [0, 16], sizes = [8, 8], strides = [1, 1]} : vector<8x32xf32> to vector<8x8xf32>
    %89 = vector.extract_strided_slice %75 {offsets = [0, 24], sizes = [8, 8], strides = [1, 1]} : vector<8x32xf32> to vector<8x8xf32>
    %90 = vector.shape_cast %86 : vector<8x8xf32> to vector<1x8x8xf32>
    %91 = vector.shape_cast %87 : vector<8x8xf32> to vector<1x8x8xf32>
    %92 = vector.shape_cast %88 : vector<8x8xf32> to vector<1x8x8xf32>
    %93 = vector.shape_cast %89 : vector<8x8xf32> to vector<1x8x8xf32>
    %94 = tpu.concatenate %90, %91, %92, %93 in 0 : vector<1x8x8xf32>, vector<1x8x8xf32>, vector<1x8x8xf32>, vector<1x8x8xf32> -> vector<4x8x8xf32>
    %95 = vector.extract_strided_slice %76 {offsets = [0, 0], sizes = [8, 8], strides = [1, 1]} : vector<8x32xf32> to vector<8x8xf32>
    %96 = vector.extract_strided_slice %76 {offsets = [0, 8], sizes = [8, 8], strides = [1, 1]} : vector<8x32xf32> to vector<8x8xf32>
    %97 = vector.extract_strided_slice %76 {offsets = [0, 16], sizes = [8, 8], strides = [1, 1]} : vector<8x32xf32> to vector<8x8xf32>
    %98 = vector.extract_strided_slice %76 {offsets = [0, 24], sizes = [8, 8], strides = [1, 1]} : vector<8x32xf32> to vector<8x8xf32>
    %99 = vector.shape_cast %95 : vector<8x8xf32> to vector<1x8x8xf32>
    %100 = vector.shape_cast %96 : vector<8x8xf32> to vector<1x8x8xf32>
    %101 = vector.shape_cast %97 : vector<8x8xf32> to vector<1x8x8xf32>
    %102 = vector.shape_cast %98 : vector<8x8xf32> to vector<1x8x8xf32>
    %103 = tpu.concatenate %99, %100, %101, %102 in 0 : vector<1x8x8xf32>, vector<1x8x8xf32>, vector<1x8x8xf32>, vector<1x8x8xf32> -> vector<4x8x8xf32>
    "tpu.trace_start"() <{level = 10 : i32, message = "hqd,hkd->hqk"}> : () -> ()
    %cst_19 = arith.constant dense<0.000000e+00> : vector<4x8x8xf32>
    %104 = tpu.matmul %85, %94, %cst_19 {dimension_numbers = #tpu.dot_dimension_numbers<[2], [2], [1], [1], [0, 0, 0, 1, 1, 1], [0], [0]>} : vector<4x8x8xf32>, vector<4x8x8xf32>, vector<4x8x8xf32> -> vector<4x8x8xf32>
    "tpu.trace_stop"() : () -> ()
    %105 = math.tanh %104 : vector<4x8x8xf32>
    %cst_20 = arith.constant 0.176776692 : f32
    %106 = vector.broadcast %cst_20 : f32 to vector<4x8x8xf32>
    %107 = arith.mulf %105, %106 : vector<4x8x8xf32>
    %108 = math.exp %107 : vector<4x8x8xf32>
    %cst_21 = arith.constant dense<0.000000e+00> : vector<4x8xf32>
    %109 = vector.multi_reduction <add>, %108, %cst_21 [2] : vector<4x8x8xf32> to vector<4x8xf32>
    %110 = vector.shape_cast %109 : vector<4x8xf32> to vector<4x8x1xf32>
    %111 = vector.broadcast %110 : vector<4x8x1xf32> to vector<4x8x8xf32>
    %112 = arith.divf %108, %111 : vector<4x8x8xf32>
    "tpu.trace_start"() <{level = 10 : i32, message = "hqk,hkd->hqd"}> : () -> ()
    %cst_22 = arith.constant dense<0.000000e+00> : vector<4x8x8xf32>
    %113 = tpu.matmul %112, %103, %cst_22 {dimension_numbers = #tpu.dot_dimension_numbers<[2], [1], [1], [2], [0, 0, 0, 1, 1, 2], [0], [0]>} : vector<4x8x8xf32>, vector<4x8x8xf32>, vector<4x8x8xf32> -> vector<4x8x8xf32>
    "tpu.trace_stop"() : () -> ()
    %114 = vector.extract_strided_slice %113 {offsets = [0, 0, 0], sizes = [1, 8, 8], strides = [1, 1, 1]} : vector<4x8x8xf32> to vector<1x8x8xf32>
    %115 = vector.shape_cast %114 : vector<1x8x8xf32> to vector<8x8xf32>
    %116 = vector.extract_strided_slice %113 {offsets = [1, 0, 0], sizes = [1, 8, 8], strides = [1, 1, 1]} : vector<4x8x8xf32> to vector<1x8x8xf32>
    %117 = vector.shape_cast %116 : vector<1x8x8xf32> to vector<8x8xf32>
    %118 = vector.extract_strided_slice %113 {offsets = [2, 0, 0], sizes = [1, 8, 8], strides = [1, 1, 1]} : vector<4x8x8xf32> to vector<1x8x8xf32>
    %119 = vector.shape_cast %118 : vector<1x8x8xf32> to vector<8x8xf32>
    %120 = vector.extract_strided_slice %113 {offsets = [3, 0, 0], sizes = [1, 8, 8], strides = [1, 1, 1]} : vector<4x8x8xf32> to vector<1x8x8xf32>
    %121 = vector.shape_cast %120 : vector<1x8x8xf32> to vector<8x8xf32>
    %122 = tpu.concatenate %115, %117, %119, %121 in 1 : vector<8x8xf32>, vector<8x8xf32>, vector<8x8xf32>, vector<8x8xf32> -> vector<8x32xf32>
    %123 = vector.extract_strided_slice %112 {offsets = [0, 0, 0], sizes = [1, 8, 8], strides = [1, 1, 1]} : vector<4x8x8xf32> to vector<1x8x8xf32>
    %124 = vector.shape_cast %123 : vector<1x8x8xf32> to vector<8x8xf32>
    %125 = vector.extract_strided_slice %112 {offsets = [1, 0, 0], sizes = [1, 8, 8], strides = [1, 1, 1]} : vector<4x8x8xf32> to vector<1x8x8xf32>
    %126 = vector.shape_cast %125 : vector<1x8x8xf32> to vector<8x8xf32>
    %127 = vector.extract_strided_slice %112 {offsets = [2, 0, 0], sizes = [1, 8, 8], strides = [1, 1, 1]} : vector<4x8x8xf32> to vector<1x8x8xf32>
    %128 = vector.shape_cast %127 : vector<1x8x8xf32> to vector<8x8xf32>
    %129 = vector.extract_strided_slice %112 {offsets = [3, 0, 0], sizes = [1, 8, 8], strides = [1, 1, 1]} : vector<4x8x8xf32> to vector<1x8x8xf32>
    %130 = vector.shape_cast %129 : vector<1x8x8xf32> to vector<8x8xf32>
    %131 = tpu.concatenate %124, %126, %128, %130 in 1 : vector<8x8xf32>, vector<8x8xf32>, vector<8x8xf32>, vector<8x8xf32> -> vector<8x32xf32>
    %c1_i32 = arith.constant 1 : i32
    %c0_23 = arith.constant 0 : index
    %c0_24 = arith.constant 0 : index
    %c0_25 = arith.constant 0 : index
    %132 = vector.load %arg7[%c0_23, %c0_24, %c0_25] : memref<1x8x32xf32, #tpu.memory_space<vmem>>, vector<1x8x32xf32>
    %133 = vector.shape_cast %132 : vector<1x8x32xf32> to vector<8x32xf32>
    %134 = vector.shape_cast %122 : vector<8x32xf32> to vector<1x8x32xf32>
    tpu.vector_store %arg7[%c0_23, %c0_24, %c0_25], %134 {strides = array<i32>} : memref<1x8x32xf32, #tpu.memory_space<vmem>>, vector<1x8x32xf32>,
    %c0_26 = arith.constant 0 : index
    %c0_27 = arith.constant 0 : index
    %c0_28 = arith.constant 0 : index
    %135 = vector.load %arg8[%c0_26, %c0_27, %c0_28] : memref<1x8x32xf32, #tpu.memory_space<vmem>>, vector<1x8x32xf32>
    %136 = vector.shape_cast %135 : vector<1x8x32xf32> to vector<8x32xf32>
    %137 = vector.shape_cast %131 : vector<8x32xf32> to vector<1x8x32xf32>
    tpu.vector_store %arg8[%c0_26, %c0_27, %c0_28], %137 {strides = array<i32>} : memref<1x8x32xf32, #tpu.memory_space<vmem>>, vector<1x8x32xf32>,
    return
  }
  func.func @transform_0(%arg0: i32) -> (i32, i32, i32) {
    %c0_i32 = arith.constant 0 : i32
    %c0_i32_0 = arith.constant 0 : i32
    %c0_i32_1 = arith.constant 0 : i32
    return %arg0, %c0_i32, %c0_i32_0 : i32, i32, i32
  }
  func.func @transform_1(%arg0: i32) -> (i32, i32, i32) {
    %c0_i32 = arith.constant 0 : i32
    %c0_i32_0 = arith.constant 0 : i32
    %c0_i32_1 = arith.constant 0 : i32
    return %arg0, %c0_i32, %c0_i32_0 : i32, i32, i32
  }
  func.func @transform_2(%arg0: i32) -> (i32, i32) {
    %c0_i32 = arith.constant 0 : i32
    %c0_i32_0 = arith.constant 0 : i32
    %c0_i32_1 = arith.constant 0 : i32
    return %c0_i32, %c0_i32_0 : i32, i32
  }
  func.func @transform_3(%arg0: i32) -> (i32, i32) {
    %c0_i32 = arith.constant 0 : i32
    %c0_i32_0 = arith.constant 0 : i32
    %c0_i32_1 = arith.constant 0 : i32
    return %c0_i32, %c0_i32_0 : i32, i32
  }
  func.func @transform_4(%arg0: i32) -> (i32, i32, i32) {
    %c0_i32 = arith.constant 0 : i32
    %c0_i32_0 = arith.constant 0 : i32
    %c0_i32_1 = arith.constant 0 : i32
    %c0_i32_2 = arith.constant 0 : i32
    return %c0_i32, %c0_i32_0, %c0_i32_1 : i32, i32, i32
  }
  func.func @transform_5(%arg0: i32) -> (i32, i32, i32) {
    %c0_i32 = arith.constant 0 : i32
    %c0_i32_0 = arith.constant 0 : i32
    %c0_i32_1 = arith.constant 0 : i32
    %c0_i32_2 = arith.constant 0 : i32
    return %c0_i32, %c0_i32_0, %c0_i32_1 : i32, i32, i32
  }
  func.func @transform_6(%arg0: i32) -> (i32, i32, i32) {
    %c0_i32 = arith.constant 0 : i32
    %c0_i32_0 = arith.constant 0 : i32
    %c0_i32_1 = arith.constant 0 : i32
    return %arg0, %c0_i32, %c0_i32_0 : i32, i32, i32
  }
  func.func @transform_7(%arg0: i32) -> (i32, i32, i32) {
    %c0_i32 = arith.constant 0 : i32
    %c0_i32_0 = arith.constant 0 : i32
    %c0_i32_1 = arith.constant 0 : i32
    return %arg0, %c0_i32, %c0_i32_0 : i32, i32, i32
  }
}

</mosaic_0001>

<bundles_post_ra>
// kernel: tpu_custom_call.1
= control target key start
LH: loop header
LB: loop body
LE: loop exit
PB: predicated region body
PF: predicated region fallthrough
CT: control target
= control target key end

     0   :  { %s3241_s0 = inlined_call_operand.hbm [shape: f32[2,8,32], index: 0, kind: input, shape index: {}]   ;;  %s3242_s1 = inlined_call_operand.hbm [shape: f32[2,8,32], index: 1, kind: input, shape index: {}]   ;;  %s3243_s2 = inlined_call_operand.hbm [shape: f32[32,32], index: 2, kind: input, shape index: {}]   ;;  %s3244_s3 = inlined_call_operand.hbm [shape: f32[32,64], index: 3, kind: input, shape index: {}]   ;;  %s3245_s4 = inlined_call_operand.hbm [shape: f32[1,32,96], index: 4, kind: input, shape index: {}]   ;;  %s3246_s5 = inlined_call_operand.vmem [shape: f32[1,1,96], index: 5, kind: input, shape index: {}]   ;;  %s3247_s6 = inlined_call_operand.hbm [shape: f32[2,8,32], index: 6, kind: output, shape index: {0}]   ;;  %s3248_s7 = inlined_call_operand.hbm [shape: f32[2,8,32], index: 7, kind: output, shape index: {1}]  }
   0x1   :  { %3253 = sst [smem:[#allocation21_spill]] %s3243_s2 }
   0x2   :  { %3254 = sst [smem:[#allocation22_spill]] %s3244_s3 }
   0x3   :  { %3255 = sst [smem:[#allocation23_spill]] %s3245_s4 }
   0x4   :  { %13 = vsyncpa [#allocation3], 0 }
   0x5   :  { %15 = vsyncpa [#allocation3 + $0x1], 0 }
   0x6   :  { %16 = vsyncpa [#allocation6], 0 }
   0x7   :  { %18 = vsyncpa [#allocation6 + $0x1], 0 }
   0x8   :  { %19 = vsyncpa [#allocation9], 0 }
   0x9   :  { %20 = vsyncpa [#allocation4], 0 }
   0xa   :  { %22 = vsyncpa [#allocation4 + $0x1], 0 }
   0xb   :  { %23 = vsyncpa [#allocation13], 0 }
   0xc   :  { %25 = vsyncpa [#allocation13 + $0x1], 0  ;;  %s2819_s24 = smov 0   ;;  %s2821_s25 = smov 0  }
   0xd   :  { %s2823_s26 = smov 0   ;;  %s2825_s27 = smov 0  }
   0xe LB: > { %s2840_s28 = sadd.s32 4294967295, %s2758_s27   ;;  %s2159_s29 = sadd.s32 4294967294, %s2758_s27   ;;  %s2758_s27 = sphi %s2825_s27, %s3280_s27   ;;  %s2754_s26 = sphi %s2823_s26, %s3279_s26   ;;  %s2750_s25 = sphi %s2821_s25, %s3278_s25   ;;  %s2746_s24 = sphi %s2819_s24, %s3277_s24  }
   0xf   : > { %p51_p0 = scmp.ne.s32.totalorder %s2750_s25, %s2746_s24  ;;  %p3249_p1 = scmp.eq.s32.totalorder %s2840_s28, 0 }
  0x10   : > { %p191_p3 = scmp.eq.s32.totalorder %s2159_s29, 1  ;;  %p2160_p5 = scmp.ge.s32.totalorder %s2758_s27, 1 }
  0x11   : > { %p2849_p4 = por %p3249_p1, %p51_p0  ;;  %p224_p7 = scmp.lt.s32.totalorder %s2758_s27, 3 }
  0x12   : > { %p2854_p6 = por %p191_p3, %p51_p0  ;;  %s2760_s10 = smov [#allocation7]  }
  0x13   : > { %s3256_s30 = scalar_select %p2849_p4, 1, 0 }
  0x14   : > { %s3257_s8 = scalar_select %p2854_p6, 1, 0 }
  0x15   : > { %p2859_p8 = pnand %p2160_p5, %p224_p7  ;;  %s236_s11 = sshll.u32 %s2760_s10, 4  ;;  %s237_s11 = int_to_ptr.vmem [resolvable:$true] %s236_s11 }
  0x16   : > { %s2761_s13 = smov [#allocation8]   ;;  %s2762_s15 = smov [#allocation10]  }
  0x17   : > { %s3258_s9 = scalar_select %p2859_p8, 1, 0 }
  0x18   : > { %p2391_p9 = pneg %p2859_p8  ;;  %s249_s14 = sshll.u32 %s2761_s13, 4  ;;  %s250_s14 = int_to_ptr.vmem [resolvable:$true] %s249_s14 }
  0x19   : > { %s262_s16 = sshll.u32 %s2762_s15, 4  ;;  %s2529_s17 = scalar_lea.vmem %s237_s11, 512  ;;  %s263_s16 = int_to_ptr.vmem [resolvable:$true] %s262_s16 }
  0x1a   : > { %p2868_p11 = pnand %p2391_p9, %p3249_p1  ;;  %p2530_p13 = scmp.ne.s32.totalorder %s237_s11, %s2529_s17 }
  0x1b   : > { %p2537_p5 = scmp.lt.s32.totalorder %s237_s11, %s237_s11  ;;  %p2538_p7 = scmp.lt.s32.totalorder %s2529_s17, %s2529_s17 }
  0x1c   : > { %p2520_p12 = pneg %p2868_p11 }
  0x1d   : > { %p2539_p9 = por %p2538_p7, %p2537_p5 }
  0x1e   : > { %p2532_p0 = pnand %p2530_p13, %p2520_p12 }
  0x20   : > { %p2533_p3 = pneg %p2532_p0 }
  0x22   : > { %p2540_p10 = pnand %p2539_p9, %p2533_p3 }
  0x24   : > { %2543 = shalt.err (!%p2540_p10)
}
  0x25   : > { %s2763_s18 = smov 128   ;;  %s2764_s19 = smov 8  }
  0x26   : > { %s3260_s2 = sld [smem:[#allocation21_spill]]  ;;  %s2555_s22 = scalar_lea.vmem %s250_s14, 512 }
  0x27   : > { %p2556_p1 = scmp.ne.s32.totalorder %s250_s14, %s2555_s22  ;;  %p2563_p2 = scmp.lt.s32.totalorder %s250_s14, %s250_s14 }
  0x28   : > { %p2564_p6 = scmp.lt.s32.totalorder %s2555_s22, %s2555_s22 }
  0x29   : > { %p2558_p13 = pnand %p2556_p1, %p2520_p12 }
  0x2a   : > { %p2565_p5 = por %p2564_p6, %p2563_p2 }
  0x2b   : > { %p2559_p0 = pneg %p2558_p13 }
  0x2c   : > { %2394 = dma.hbm_to_vmem [thread:$0]  (!%p2868_p11), %s3260_s2, 512, %s237_s11, [#allocation6], %s2763_s18, %s2763_s18, %s2764_s19  }
  0x2d   : > { %p2566_p3 = pnand %p2565_p5, %p2559_p0 }
  0x2f   : > { %2569 = shalt.err (!%p2566_p3)
}
  0x30   : > { %s3261_s3 = sld [smem:[#allocation22_spill]]  ;;  %s2581_s10 = scalar_lea.vmem %s263_s16, 512 }
  0x31   : > { %p2582_p10 = scmp.ne.s32.totalorder %s263_s16, %s2581_s10  ;;  %p2589_p9 = scmp.lt.s32.totalorder %s263_s16, %s263_s16 }
  0x32   : > { %p2590_p13 = scmp.lt.s32.totalorder %s2581_s10, %s2581_s10 }
  0x33   : > { %p2584_p7 = pnand %p2582_p10, %p2520_p12 }
  0x34   : > { %p2591_p4 = por %p2590_p13, %p2589_p9 }
  0x35   : > { %p2585_p1 = pneg %p2584_p7 }
  0x36   : > { %2397 = dma.hbm_to_vmem [thread:$0]  (!%p2868_p11), %s3261_s3, 512, %s250_s14, [#allocation9], %s2763_s18, %s2763_s18, %s2764_s19  }
  0x37   : > { %p2592_p2 = pnand %p2591_p4, %p2585_p1 }
  0x39   : > { %2595 = shalt.err (!%p2592_p2)
}
  0x3a   : > { %s3262_s4 = sld [smem:[#allocation23_spill]]  ;;  %s2899_s14 = sadd.s32 1, %s2758_s27  }
  0x3b   : > { %s35_s15 = ssub.s32 %s2758_s27, %s2899_s14  ;;  %s38_s12 = sadd.s32 1, %s2754_s26 }
  0x3c   : > { %p36_p4 = scmp.eq.s32.totalorder %s35_s15, 0  ;;  %p45_p6 = scmp.ne.s32.totalorder %s2754_s26, %s2750_s25 }
  0x3d   : > { %p46_p12 = scmp.eq.s32.totalorder %s2758_s27, 0  ;;  %p2418_p0 = scmp.lt.s32.totalorder %s2758_s27, 2 }
  0x3e   : > { %s2909_s17 = scalar_select %p36_p4, %s2754_s26, %s38_s12  }
  0x3f   : > { %p47_p5 = por %p46_p12, %p45_p6  ;;  %p3264_p3 = scmp.eq.s32.totalorder %s2840_s28, 1 }
  0x40   : > { %2400 = dma.hbm_to_vmem [thread:$0]  (!%p2868_p11), %s3262_s4, 512, %s263_s16, [#allocation9], %s2763_s18, %s2763_s18, %s2764_s19  }
  0x41   : > { %3263 = sst [smem:[#allocation20_spill]] %s2909_s17  ;;  %p2913_p10 = por %p3264_p3, %p45_p6 }
  0x42   : > { %s279_s21 = sand.u32 1, %s2754_s26   ;;  %s2166_s22 = sshll.u32 %s2758_s27, 7 }
  0x43   : > { %s3265_s20 = scalar_select %p2913_p10, 1, 0 }
  0x44   : > { %s2919_s16 = sshll.u32 %s279_s21, 3  ;;  %s2924_s23 = scalar_lea.hbm %s3241_s0, %s2166_s22 }
  0x45   : > { %s283_s29 = scalar_lea.vmem [#allocation2], %s2919_s16  ;;  %p2927_p11 = pnand %p2418_p0, %p47_p5 }
  0x46   : > { %s290_s10 = sshll.u32 %s283_s29, 4  ;;  %s2934_s12 = scalar_lea.hbm %s3242_s1, %s2166_s22  ;;  %s291_s10 = int_to_ptr.vmem [resolvable:$true] %s290_s10 }
  0x47   : > { %s280_s18 = scalar_lea.sflag [#allocation3], %s279_s21  ;;  %s2596_s19 = scalar_lea.hbm %s2924_s23, 128 }
  0x48   : > { %p2597_p7 = scmp.ne.s32.totalorder %s2924_s23, %s2596_s19  ;;  %p2598_p1 = pneg %p2927_p11 }
  0x49   : > { %s2601_s3 = scalar_lea.hbm %s3241_s0, 256  ;;  %p2602_p2 = scmp.lt.s32.totalorder %s2924_s23, %s3241_s0 }
  0x4a   : > { %p2599_p9 = pnand %p2598_p1, %p2597_p7  ;;  %p2603_p4 = scmp.lt.s32.totalorder %s2601_s3, %s2596_s19 }
  0x4c   : > { %p2600_p13 = pneg %p2599_p9  ;;  %p2604_p6 = por %p2603_p4, %p2602_p2 }
  0x4e   : > { %p2605_p12 = pnand %p2604_p6, %p2600_p13 }
  0x50   : > { %2608 = shalt.err (!%p2605_p12)
}
  0x51   : > { %s2609_s21 = scalar_lea.vmem %s291_s10, 128  ;;  %s2765_s22 = smov [#allocation2]  }
  0x52   : > { %p2610_p0 = scmp.ne.s32.totalorder %s291_s10, %s2609_s21  ;;  %s2614_s13 = sshll.u32 %s2765_s22, 4  ;;  %s2615_s13 = int_to_ptr.vmem [resolvable:$false] %s2614_s13 }
  0x53   : > { %s2616_s2 = scalar_lea.vmem %s2615_s13, 256  ;;  %p2617_p7 = scmp.lt.s32.totalorder %s291_s10, %s2615_s13 }
  0x54   : > { %p2612_p5 = pnand %p2610_p0, %p2598_p1  ;;  %p2618_p9 = scmp.lt.s32.totalorder %s2616_s2, %s2609_s21 }
  0x56   : > { %p2613_p3 = pneg %p2612_p5  ;;  %p2619_p10 = por %p2618_p9, %p2617_p7 }
  0x58   : > { %p2620_p8 = pnand %p2619_p10, %p2613_p3 }
  0x5a   : > { %2623 = shalt.err (!%p2620_p8)
}
  0x5b   : > { %2404 = dma.hbm_to_vmem [thread:$0]  (!%p2927_p11), %s2924_s23, 128, %s291_s10, %s280_s18  }
  0x5c   : > { %s297_s3 = sand.u32 1, %s2758_s27   ;;  %s301_s4 = scalar_lea.vmem [#allocation5], %s2919_s16 }
  0x5d   : > { %s308_s17 = sshll.u32 %s301_s4, 4  ;;  %s298_s15 = scalar_lea.sflag [#allocation6], %s297_s3  ;;  %s309_s17 = int_to_ptr.vmem [resolvable:$true] %s308_s17 }
  0x5e   : > { %s2624_s19 = scalar_lea.hbm %s2934_s12, 128  ;;  %s2629_s22 = scalar_lea.hbm %s3242_s1, 256 }
  0x5f   : > { %p2625_p13 = scmp.ne.s32.totalorder %s2934_s12, %s2624_s19  ;;  %p2630_p2 = scmp.lt.s32.totalorder %s2934_s12, %s3242_s1 }
  0x60   : > { %p2631_p4 = scmp.lt.s32.totalorder %s2629_s22, %s2624_s19 }
  0x61   : > { %p2627_p8 = pnand %p2625_p13, %p2598_p1 }
  0x62   : > { %p2632_p6 = por %p2631_p4, %p2630_p2 }
  0x63   : > { %p2628_p10 = pneg %p2627_p8 }
  0x65   : > { %p2633_p12 = pnand %p2632_p6, %p2628_p10 }
  0x67   : > { %2636 = shalt.err (!%p2633_p12)
}
  0x68   : > { %s2637_s16 = scalar_lea.vmem %s309_s17, 128  ;;  %s2766_s23 = smov [#allocation5]  }
  0x69   : > { %p2638_p0 = scmp.ne.s32.totalorder %s309_s17, %s2637_s16  ;;  %s2642_s10 = sshll.u32 %s2766_s23, 4  ;;  %s2643_s10 = int_to_ptr.vmem [resolvable:$false] %s2642_s10 }
  0x6a   : > { %s2644_s18 = scalar_lea.vmem %s2643_s10, 256  ;;  %p2645_p7 = scmp.lt.s32.totalorder %s309_s17, %s2643_s10 }
  0x6b   : > { %p2640_p5 = pnand %p2638_p0, %p2598_p1  ;;  %p2646_p9 = scmp.lt.s32.totalorder %s2644_s18, %s2637_s16 }
  0x6d   : > { %p2641_p3 = pneg %p2640_p5  ;;  %p2647_p13 = por %p2646_p9, %p2645_p7 }
  0x6f   : > { %p2648_p8 = pnand %p2647_p13, %p2641_p3 }
  0x71   : > { %2651 = shalt.err (!%p2648_p8)
}
  0x72   : > { %2407 = dma.hbm_to_vmem [thread:$0]  (!%p2927_p11), %s2934_s12, 128, %s309_s17, %s298_s15  }
  0x73   : > { %p3267_p10 = scmp.ne.s32.totalorder %s3258_s9, 0 }
  0x74   : > { %s2979_s3 = sand.u32 (!%p3267_p10), 1, %s2750_s25   ;;  %p3268_p1 = scmp.ne.s32.totalorder (!%p3267_p10), %s3256_s30, 0 }
  0x75   : > { %317 = sbr.rel (%p3267_p10) target bundleno = 2300 (0x8fc), region = 44  ;;  %s2982_s4 = sshll.u32 (!%p3267_p10), %s2979_s3, 3 }
  0x76   : > { %s320_s19 = scalar_lea.sflag (!%p3267_p10), [#allocation3], %s2979_s3  ;;  %s323_s29 = scalar_lea.vmem (!%p3267_p10), [#allocation2], %s2982_s4 }
  0x7a   : > { %2721 = dma.done.wait (%p3268_p1), %s320_s19, 128  }
  0x7b   : > { %2723 = vsyncadd (%p3268_p1), %s320_s19, 4294967168  ;;  %s328_s9 = sand.u32 1, %s2840_s28   ;;  %s332_s12 = scalar_lea.vmem [#allocation5], %s2982_s4 }
  0x7c   : > { %s329_s11 = scalar_lea.sflag [#allocation6], %s328_s9 }
  0x7d   : > { %2725 = dma.done.wait (%p3268_p1), %s329_s11, 128  }
  0x7e   : > { %2727 = vsyncadd (%p3268_p1), %s329_s11, 4294967168  ;;  %p3269_p11 = scmp.eq.s32.totalorder %s2840_s28, 0 }
  0x80   : > { %2729 = dma.done.wait (%p3269_p11), [#allocation6], 512   ;;  %p3270_p2 = pmov %p3269_p11 }
  0x82   : > { %2731 = vsyncadd (%p3270_p2), [#allocation6], 4294966784  ;;  %p3271_p4 = pmov %p3270_p2 }
  0x83   : > { %p3272_p6 = pmov %p3270_p2 }
  0x84   : > { %2733 = dma.done.wait (%p3271_p4), [#allocation9], 1024  }
  0x85   : > { %2735 = vsyncadd (%p3272_p6), [#allocation9], 4294966272  ;;  %v2767_v0 = vmov 0.0   ;;  %vm2768_vm0 = vmmov 0   ;;  %v468_v1 = vld [vmem:[#allocation8 + $0x18] sm:$0xff]  ;;  %v467_v3 = vld [vmem:[#allocation8 + $0x10] sm:$0xff] }
  0x86   : > { %2269 = vmatprep.subr.mxu1 %v2767_v0  ;;  %2258 = vmatprep.subr.mxu0 %v2767_v0  ;;  %v389_v2 = vld [vmem:[#allocation7 + $0x18] sm:$0xff]  ;;  %v388_v4 = vld [vmem:[#allocation7 + $0x10] sm:$0xff]  ;;  %v466_v5 = vld [vmem:[#allocation8 + $0x8] sm:$0xff]  ;;  %vm390_vm1 = vcmask 261120   ;;  %vm556_vm2 = vcmask 64512   ;;  %s2769_s30 = smov 112  }
  0x87   : > { %2277 = vmatprep.mubr.msk.f32.mxu1 %vm2768_vm0, %v2767_v0  ;;  %2266 = vmatprep.mubr.msk.f32.mxu0 %vm2768_vm0, %v2767_v0  ;;  %v387_v6 = vld [vmem:[#allocation7 + $0x8] sm:$0xff]  ;;  %v465_v7 = vld [vmem:[#allocation8] sm:$0xff]  ;;  %v464_v9 = vld [vmem:[%s332_s12] sm:$0xff]  ;;  %s2770_s17 = smov 120   ;;  %s2771_s15 = smov 104   ;;  %vm1206_vm3 = vcmask 130048  }
  0x88   : > { %2270 = vmatpush3.msra.mxu1 %v468_v1  ;;  %2259 = vmatpush3.msra.mxu0 %v389_v2  ;;  %v386_v8 = vld [vmem:[#allocation7] sm:$0xff]  ;;  %s2772_s21 = smov 96   ;;  %s2773_s22 = smov 8   ;;  %vm1208_vm4 = vcmask 195584  }
  0x89   : > { %2271 = vmatprep.subr.mxu1 %v2767_v0  ;;  %2260 = vmatprep.subr.mxu0 %v2767_v0  ;;  %v385_v10 = vld [vmem:[%s323_s29] sm:$0xff]  ;;  %s2774_s13 = smov 16   ;;  %s2775_s2 = smov 24  }
  0x8a   : > { %2272 = vmatpush3.msra.mxu1 %v467_v3  ;;  %2261 = vmatpush3.msra.mxu0 %v388_v4  ;;  %v1213_v4 = vld [vmem:[#allocation10 + $0x18] sm:$0xff]  ;;  %s2776_s10 = smov 64   ;;  %s384_s18 = scalar_lea.vmem [#allocation12], %s2982_s4 }
  0x8b   : > { %2273 = vmatprep.subr.mxu1 %v2767_v0  ;;  %2262 = vmatprep.subr.mxu0 %v2767_v0  ;;  %s2207_s19 = sshll.u32 %s2840_s28, 7  ;;  %s2006_s12 = sshll.u32 %s384_s18, 4  ;;  %s2007_s12 = int_to_ptr.vmem [resolvable:$true] %s2006_s12 }
  0x8c   : > { %2274 = vmatpush3.msra.mxu1 %v466_v5  ;;  %2263 = vmatpush3.msra.mxu0 %v387_v6  ;;  %v1212_v5 = vld [vmem:[#allocation10 + $0x10] sm:$0xff]  ;;  %v1211_v6 = vld [vmem:[#allocation10 + $0x8] sm:$0xff]  ;;  %s3172_s11 = scalar_lea.hbm %s3248_s7, %s2207_s19  ;;  %p3273_p0 = scmp.ne.s32.totalorder %s3265_s20, 0 }
  0x8d   : > { %2275 = vmatprep.subr.mxu1 %v2767_v0  ;;  %2264 = vmatprep.subr.mxu0 %v2767_v0 }
  0x8e   : > { %2276 = vmatpush3.msra.mxu1 %v465_v7  ;;  %2265 = vmatpush3.msra.mxu0 %v386_v8  ;;  %v1210_v7 = vld [vmem:[#allocation10] sm:$0xff] }
  0x8f   : > { %2278 = vmatmul.mubr.msk.f32.vlgmr.msra.gmra.mxu1 %vm390_vm1, %v464_v9  ;;  %2267 = vmatmul.mubr.msk.f32.vlgmr.msra.gmra.mxu0 %vm390_vm1, %v385_v10 }
  0x90   : > { %2280 = vmatprep.subr.mxu0 %v2767_v0  ;;  %2282 = vmatprep.mubr.msk.f32.mxu0 %vm2768_vm0, %v2767_v0 }
  0x91   : > { %2285 = vmatprep.subr.mxu1 %v2767_v0  ;;  %2287 = vmatprep.mubr.msk.f32.mxu1 %vm2768_vm0, %v2767_v0 }
 0x14f   : > { %v538_v11 = vpop.f32.mrf.mxu1  ;;  %v460_v12 = vpop.f32.mrf.mxu0 }
 0x150   : > { %552 = vrot.lane.b32.xlu1 %v538_v11, %s2769_s30  ;;  %550 = vrot.lane.b32.xlu0 %v538_v11, %s2770_s17 }
 0x151   : > { %2281 = vmatpush3.xpose.msk.msra.mxu0 %vm556_vm2, %v538_v11  ;;  %v2279_v13 = vpop.f32.mrf.mxu1  ;;  %v2268_v14 = vpop.f32.mrf.mxu0 }
 0x152   : > { %2290 = vmatprep.subr.mxu0 %v2767_v0 }
 0x154   : > { %2283 = vmatmul.mubr.msk.f32.vlgmr.msra.gmra.mxu0 %vm556_vm2, %v460_v12  ;;  %554 = vrot.lane.b32.xlu1 %v538_v11, %s2771_s15 }
 0x155   : > { %543 = vrot.lane.b32.xlu0 %v460_v12, %s2770_s17  ;;  %2292 = vmatprep.mubr.msk.f32.mxu0 %vm2768_vm0, %v2767_v0 }
 0x158   : > { %547 = vrot.lane.b32.xlu1 %v460_v12, %s2771_s15 }
 0x159   : > { %545 = vrot.lane.b32.xlu0 %v460_v12, %s2769_s30 }
 0x15c   : > { %889 = vrot.lane.b32.xlu1 %v538_v11, %s2772_s21 }
 0x1c2   : > { %v553_v15 = vpop.permute.xlu1 %552  ;;  %v3040_v16 = vpop.permute.xlu0 %550 }
 0x1c3   : > { %2286 = vmatpush3.xpose.msk.msra.mxu1 %vm556_vm2, %v3040_v16  ;;  %2291 = vmatpush3.xpose.msk.msra.mxu0 %vm556_vm2, %v553_v15 }
 0x1c4   : > { %2295 = vmatprep.subr.mxu1 %v2767_v0  ;;  %2300 = vmatprep.subr.mxu0 %v2767_v0 }
 0x1c6   : > { %v555_v17 = vpop.permute.xlu1 %554 }
 0x1c7   : > { %v544_v18 = vpop.permute.xlu0 %543 }
 0x1c8   : > { %2288 = vmatmul.mubr.msk.f32.vlgmr.msra.gmra.mxu1 %vm556_vm2, %v544_v18 }
 0x1c9   : > { %2296 = vmatpush3.xpose.msk.msra.mxu1 %vm556_vm2, %v555_v17  ;;  %2297 = vmatprep.mubr.msk.f32.mxu1 %vm2768_vm0, %v2767_v0 }
 0x1ca   : > { %v548_v19 = vpop.permute.xlu1 %547  ;;  %2305 = vmatprep.subr.mxu1 %v2767_v0 }
 0x1cb   : > { %v546_v20 = vpop.permute.xlu0 %545 }
 0x1cc   : > { %2293 = vmatmul.mubr.msk.f32.vlgmr.msra.gmra.mxu0 %vm556_vm2, %v546_v20  ;;  %2298 = vmatmul.mubr.msk.f32.vlgmr.msra.gmra.mxu1 %vm556_vm2, %v548_v19  ;;  %v2191_v20 = vld [vmem:[%s3246_s5] ss:$0 sm:$0xff] }
 0x1cd   : > { %2302 = vmatprep.mubr.msk.f32.mxu0 %vm2768_vm0, %v2767_v0  ;;  %2307 = vmatprep.mubr.msk.f32.mxu1 %vm2768_vm0, %v2767_v0 }
 0x1ce   : > { %v890_v21 = vpop.permute.xlu1 %889 }
 0x1cf   : > { %2301 = vmatpush3.msra.mxu0 %v890_v21 }
 0x1d0   : > { %2310 = vmatprep.subr.mxu0 %v2767_v0 }
 0x214   : > { %v627_v22 = vpop.f32.mrf.mxu0 }
 0x215   : > { %2470 = vtanh.f32 %v627_v22 }
 0x216   : > { %v2284_v23 = vpop.f32.mrf.mxu0 }
 0x222   : > { %v2471_v24 = vpop.eup %2470 }
 0x223   : > { %v857_v25 = vmul.f32 0.17677669, %v2471_v24 }
 0x225   : > { %v861_v26 = vmul.f32 1.442695, %v857_v25 }
 0x227   : > { %2472 = vpow2.f32 %v861_v26 }
 0x234   : > { %v2473_v27 = vpop.eup %2472 }
 0x235   : > { %v869_v28 = vsel %vm556_vm2, %v2473_v27, 0.0 }
 0x236   : > { %870 = vadd.xlane.f32.xlu0 %v869_v28 }
 0x288   : > { %v701_v29 = vpop.f32.mrf.mxu1 }
 0x289   : > { %2474 = vtanh.f32 %v701_v29 }
 0x28a   : > { %v2289_v30 = vpop.f32.mrf.mxu1 }
 0x28c   : > { %v775_v31 = vpop.f32.mrf.mxu0  ;;  %v849_v32 = vpop.f32.mrf.mxu1 }
 0x28d   : > { %2476 = vtanh.f32 %v775_v31 }
 0x28e   : > { %2478 = vtanh.f32 %v849_v32  ;;  %v2294_v33 = vpop.f32.mrf.mxu0  ;;  %v2299_v34 = vpop.f32.mrf.mxu1 }
 0x296   : > { %v2475_v35 = vpop.eup %2474 }
 0x297   : > { %v858_v36 = vmul.f32 0.17677669, %v2475_v35 }
 0x299   : > { %v863_v37 = vmul.f32 1.442695, %v858_v36 }
 0x29a   : > { %v2477_v38 = vpop.eup %2476 }
 0x29b   : > { %v2479_v39 = vpop.eup %2478  ;;  %2480 = vpow2.f32 %v863_v37  ;;  %v859_v40 = vmul.f32 0.17677669, %v2477_v38 }
 0x29c   : > { %v860_v41 = vmul.f32 0.17677669, %v2479_v39 }
 0x29d   : > { %v865_v42 = vmul.f32 1.442695, %v859_v40 }
 0x29e   : > { %v867_v43 = vmul.f32 1.442695, %v860_v41 }
 0x29f   : > { %2482 = vpow2.f32 %v865_v42 }
 0x2a0   : > { %2484 = vpow2.f32 %v867_v43 }
 0x2a8   : > { %v2481_v44 = vpop.eup %2480 }
 0x2a9   : > { %v872_v45 = vsel %vm556_vm2, %v2481_v44, 0.0 }
 0x2aa   : > { %873 = vadd.xlane.f32.xlu1 %v872_v45 }
 0x2ac   : > { %v2483_v46 = vpop.eup %2482 }
 0x2ad   : > { %v875_v47 = vsel %vm556_vm2, %v2483_v46, 0.0  ;;  %v2485_v48 = vpop.eup %2484 }
 0x2ae   : > { %876 = vadd.xlane.f32.xlu0 %v875_v47  ;;  %v878_v49 = vsel %vm556_vm2, %v2485_v48, 0.0 }
 0x2b2   : > { %879 = vadd.xlane.f32.xlu0 %v878_v49 }
 0x2bb   : > { %1041 = vrot.lane.b32.xlu1 %v553_v15, %s2772_s21 }
 0x2bf   : > { %1117 = vrot.lane.b32.xlu1 %v555_v17, %s2772_s21  ;;  %v871_v50 = vpop.xlane.xlu0 %870 }
 0x2c0   : > { %2486 = vrcp.f32 %v871_v50 }
 0x2c8   : > { %965 = vrot.lane.b32.xlu0 %v3040_v16, %s2772_s21 }
 0x2cd   : > { %v2487_v51 = vpop.eup %2486 }
 0x2ce   : > { %v882_v52 = vmul.f32 %v2487_v51, %v2473_v27 }
 0x2d0   : > { %2303 = vmatmul.mubr.msk.f32.vlgmr.msra.gmra.mxu0 %vm556_vm2, %v882_v52 }
 0x2d1   : > { %2312 = vmatprep.mubr.msk.f32.mxu0 %vm2768_vm0, %v2767_v0 }
 0x333   : > { %v874_v53 = vpop.xlane.xlu1 %873 }
 0x334   : > { %2488 = vrcp.f32 %v874_v53 }
 0x337   : > { %v1042_v54 = vpop.permute.xlu1 %1041  ;;  %v877_v55 = vpop.xlane.xlu0 %876 }
 0x338   : > { %2490 = vrcp.f32 %v877_v55  ;;  %2311 = vmatpush3.msra.mxu0 %v1042_v54 }
 0x339   : > { %2320 = vmatprep.subr.mxu0 %v2767_v0 }
 0x33b   : > { %v880_v56 = vpop.xlane.xlu0 %879  ;;  %v1118_v60 = vpop.permute.xlu1 %1117 }
 0x33c   : > { %2492 = vrcp.f32 %v880_v56 }
 0x33f   : > { %v966_v57 = vpop.permute.xlu0 %965 }
 0x340   : > { %2306 = vmatpush3.msra.mxu1 %v966_v57 }
 0x341   : > { %v2489_v58 = vpop.eup %2488  ;;  %2315 = vmatprep.subr.mxu1 %v2767_v0 }
 0x342   : > { %v884_v59 = vmul.f32 %v2489_v58, %v2481_v44 }
 0x344   : > { %2308 = vmatmul.mubr.msk.f32.vlgmr.msra.gmra.mxu1 %vm556_vm2, %v884_v59 }
 0x345   : > { %v2491_v61 = vpop.eup %2490  ;;  %2316 = vmatpush3.msra.mxu1 %v1118_v60  ;;  %2317 = vmatprep.mubr.msk.f32.mxu1 %vm2768_vm0, %v2767_v0 }
 0x346   : > { %v886_v62 = vmul.f32 %v2491_v61, %v2483_v46  ;;  %2331 = vmatprep.subr.mxu1 %v2767_v0 }
 0x348   : > { %2313 = vmatmul.mubr.msk.f32.vlgmr.msra.gmra.mxu0 %vm556_vm2, %v886_v62 }
 0x349   : > { %v2493_v63 = vpop.eup %2492  ;;  %2328 = vmatprep.mubr.msk.f32.mxu0 %vm2768_vm0, %v2767_v0  ;;  %2321 = vmatpush3.msra.mxu0 %v1213_v4 }
 0x34a   : > { %v888_v1 = vmul.f32 %v2493_v63, %v2485_v48  ;;  %2322 = vmatprep.subr.mxu0 %v2767_v0 }
 0x34b   : > { %2323 = vmatpush3.msra.mxu0 %v1212_v5 }
 0x34c   : > { %2318 = vmatmul.mubr.msk.f32.vlgmr.msra.gmra.mxu1 %vm556_vm2, %v888_v1  ;;  %2324 = vmatprep.subr.mxu0 %v2767_v0 }
 0x34d   : > { %2333 = vmatprep.mubr.msk.f32.mxu1 %vm2768_vm0, %v2767_v0  ;;  %2325 = vmatpush3.msra.mxu0 %v1211_v6 }
 0x34e   : > { %2326 = vmatprep.subr.mxu0 %v2767_v0 }
 0x34f   : > { %2327 = vmatpush3.msra.mxu0 %v1210_v7 }
 0x350   : > { %2341 = vmatprep.subr.mxu0 %v2767_v0 }
 0x390   : > { %v961_v2 = vpop.f32.mrf.mxu0 }
 0x392   : > { %v2304_v3 = vpop.f32.mrf.mxu0 }
 0x404   : > { %v1037_v8 = vpop.f32.mrf.mxu1 }
 0x405   : > { %1194 = vrot.lane.b32.xlu0 %v1037_v8, %s2773_s22 }
 0x406   : > { %v2309_v9 = vpop.f32.mrf.mxu1 }
 0x408   : > { %v1113_v10 = vpop.f32.mrf.mxu0 }
 0x409   : > { %1198 = vrot.lane.b32.xlu1 %v1113_v10, %s2774_s13 }
 0x40a   : > { %v2314_v11 = vpop.f32.mrf.mxu0 }
 0x40c   : > { %v1189_v12 = vpop.f32.mrf.mxu1 }
 0x40d   : > { %1202 = vrot.lane.b32.xlu0 %v1189_v12, %s2775_s2 }
 0x40e   : > { %v2319_v13 = vpop.f32.mrf.mxu1 }
 0x477   : > { %v1195_v14 = vpop.permute.xlu0 %1194 }
 0x478   : > { %v1205_v16 = vsel %vm556_vm2, %v961_v2, %v1195_v14 }
 0x47b   : > { %v1199_v15 = vpop.permute.xlu1 %1198 }
 0x47c   : > { %v1207_v17 = vsel %vm1206_vm3, %v1205_v16, %v1199_v15 }
 0x47f   : > { %v1203_v18 = vpop.permute.xlu0 %1202 }
 0x480   : > { %v1209_v19 = vsel %vm1208_vm4, %v1207_v17, %v1203_v18 }
 0x481   : > { %2329 = vmatmul.mubr.msk.f32.vlgmr.msra.gmra.mxu0 %vm390_vm1, %v1209_v19 }
 0x482   : > { %2343 = vmatprep.mubr.msk.f32.mxu0 %vm2768_vm0, %v2767_v0 }
 0x541   : > { %v1290_v21 = vpop.f32.mrf.mxu0 }
 0x542   : > { %v1291_v22 = vadd.f32 %v2191_v20, %v1290_v21 }
 0x543   : > { %v2330_v23 = vpop.f32.mrf.mxu0 }
 0x544   : > { %1297 = vrot.lane.b32.xlu0 %v1291_v22, %s2769_s30  ;;  %1295 = vrot.lane.b32.xlu1 %v1291_v22, %s2770_s17  ;;  %s1980_s30 = scalar_lea.sflag [#allocation13], %s2979_s3  ;;  %s2652_s17 = scalar_lea.vmem %s2007_s12, 128 }
 0x545   : > { %p2653_p12 = scmp.ne.s32.totalorder %s2007_s12, %s2652_s17 }
 0x547   : > { %p2654_p5 = pnand %p2653_p12, %p3273_p0 }
 0x548   : > { %1301 = vrot.lane.b32.xlu0 %v1291_v22, %s2772_s21  ;;  %1299 = vrot.lane.b32.xlu1 %v1291_v22, %s2771_s15  ;;  %s2777_s15 = smov [#allocation12]  }
 0x549   : > { %p2655_p3 = pneg %p2654_p5 }
 0x5b6   : > { %v3102_v24 = vpop.permute.xlu0 %1297  ;;  %v3104_v25 = vpop.permute.xlu1 %1295 }
 0x5b7   : > { %1453 = vrot.lane.b32.xlu0 %v3102_v24, %s2772_s21  ;;  %1377 = vrot.lane.b32.xlu1 %v3104_v25, %s2772_s21 }
 0x5ba   : > { %v1302_v26 = vpop.permute.xlu0 %1301  ;;  %v3110_v27 = vpop.permute.xlu1 %1299 }
 0x5bb   : > { %2332 = vmatpush3.xpose.msk.msra.mxu1 %vm556_vm2, %v1302_v26  ;;  %1529 = vrot.lane.b32.xlu1 %v3110_v27, %s2772_s21  ;;  %s2656_s21 = sshll.u32 %s2777_s15, 4  ;;  %s2657_s21 = int_to_ptr.vmem [resolvable:$false] %s2656_s21 }
 0x5bc   : > { %2336 = vmatprep.subr.mxu1 %v2767_v0  ;;  %s2658_s16 = scalar_lea.vmem %s2657_s21, 256  ;;  %p2659_p7 = scmp.lt.s32.totalorder %s2007_s12, %s2657_s21 }
 0x5bd   : > { %p2660_p9 = scmp.lt.s32.totalorder %s2658_s16, %s2652_s17 }
 0x5be   : > { %2334 = vmatmul.mubr.msk.f32.vlgmr.msra.gmra.mxu1 %vm556_vm2, %v1291_v22 }
 0x5bf   : > { %1641 = vrot.lane.b32.xlu1 %v1291_v22, %s2776_s10  ;;  %2338 = vmatprep.mubr.msk.f32.mxu1 %vm2768_vm0, %v2767_v0  ;;  %p2661_p13 = por %p2660_p9, %p2659_p7 }
 0x5c1   : > { %p2662_p8 = pnand %p2661_p13, %p2655_p3 }
 0x629   : > { %v1454_v28 = vpop.permute.xlu0 %1453  ;;  %v1378_v29 = vpop.permute.xlu1 %1377 }
 0x62a   : > { %2337 = vmatpush3.xpose.msk.msra.mxu1 %vm556_vm2, %v1378_v29  ;;  %2342 = vmatpush3.xpose.msk.msra.mxu0 %vm556_vm2, %v1454_v28 }
 0x62b   : > { %2346 = vmatprep.subr.mxu1 %v2767_v0  ;;  %2351 = vmatprep.subr.mxu0 %v2767_v0 }
 0x62d   : > { %2339 = vmatmul.mubr.msk.f32.vlgmr.msra.gmra.mxu1 %vm556_vm2, %v3104_v25  ;;  %2344 = vmatmul.mubr.msk.f32.vlgmr.msra.gmra.mxu0 %vm556_vm2, %v3102_v24  ;;  %v1530_v30 = vpop.permute.xlu1 %1529 }
 0x62e   : > { %2347 = vmatpush3.xpose.msk.msra.mxu1 %vm556_vm2, %v1530_v30  ;;  %2348 = vmatprep.mubr.msk.f32.mxu1 %vm2768_vm0, %v2767_v0 }
 0x62f   : > { %2353 = vmatprep.mubr.msk.f32.mxu0 %vm2768_vm0, %v2767_v0  ;;  %2356 = vmatprep.subr.mxu1 %v2767_v0 }
 0x631   : > { %2349 = vmatmul.mubr.msk.f32.vlgmr.msra.gmra.mxu1 %vm556_vm2, %v3110_v27  ;;  %v1642_v31 = vpop.permute.xlu1 %1641 }
 0x632   : > { %2352 = vmatpush3.msra.mxu0 %v1642_v31  ;;  %2358 = vmatprep.mubr.msk.f32.mxu1 %vm2768_vm0, %v2767_v0 }
 0x633   : > { %2361 = vmatprep.subr.mxu0 %v2767_v0 }
 0x67e   : > { %v1373_v32 = vpop.f32.mrf.mxu1 }
 0x67f   : > { %2494 = vtanh.f32 %v1373_v32 }
 0x680   : > { %v2335_v33 = vpop.f32.mrf.mxu1 }
 0x68c   : > { %v2495_v34 = vpop.eup %2494 }
 0x68d   : > { %v1609_v35 = vmul.f32 0.17677669, %v2495_v34 }
 0x68f   : > { %v1613_v36 = vmul.f32 1.442695, %v1609_v35 }
 0x691   : > { %2496 = vpow2.f32 %v1613_v36 }
 0x69e   : > { %v2497_v37 = vpop.eup %2496 }
 0x69f   : > { %v1621_v38 = vsel %vm556_vm2, %v2497_v37, 0.0 }
 0x6a0   : > { %1622 = vadd.xlane.f32.xlu0 %v1621_v38 }
 0x6ed   : > { %v1449_v39 = vpop.f32.mrf.mxu1  ;;  %v1525_v40 = vpop.f32.mrf.mxu0 }
 0x6ee   : > { %2498 = vtanh.f32 %v1449_v39 }
 0x6ef   : > { %2500 = vtanh.f32 %v1525_v40  ;;  %v2340_v41 = vpop.f32.mrf.mxu1  ;;  %v2345_v42 = vpop.f32.mrf.mxu0 }
 0x6f1   : > { %v1601_v43 = vpop.f32.mrf.mxu1 }
 0x6f2   : > { %2502 = vtanh.f32 %v1601_v43 }
 0x6f3   : > { %v2350_v44 = vpop.f32.mrf.mxu1 }
 0x6fb   : > { %v2499_v45 = vpop.eup %2498 }
 0x6fc   : > { %v2501_v46 = vpop.eup %2500  ;;  %v1610_v47 = vmul.f32 0.17677669, %v2499_v45 }
 0x6fd   : > { %v1611_v48 = vmul.f32 0.17677669, %v2501_v46 }
 0x6fe   : > { %v1615_v49 = vmul.f32 1.442695, %v1610_v47 }
 0x6ff   : > { %v2503_v50 = vpop.eup %2502  ;;  %v1617_v51 = vmul.f32 1.442695, %v1611_v48 }
 0x700   : > { %2504 = vpow2.f32 %v1615_v49  ;;  %v1612_v52 = vmul.f32 0.17677669, %v2503_v50 }
 0x701   : > { %2506 = vpow2.f32 %v1617_v51 }
 0x702   : > { %v1619_v53 = vmul.f32 1.442695, %v1612_v52 }
 0x704   : > { %2508 = vpow2.f32 %v1619_v53 }
 0x70d   : > { %v2505_v54 = vpop.eup %2504 }
 0x70e   : > { %v2507_v55 = vpop.eup %2506  ;;  %v1624_v56 = vsel %vm556_vm2, %v2505_v54, 0.0 }
 0x70f   : > { %1625 = vadd.xlane.f32.xlu1 %v1624_v56  ;;  %v1627_v57 = vsel %vm556_vm2, %v2507_v55, 0.0 }
 0x710   : > { %1628 = vadd.xlane.f32.xlu0 %v1627_v57 }
 0x711   : > { %v2509_v58 = vpop.eup %2508 }
 0x712   : > { %v1630_v59 = vsel %vm556_vm2, %v2509_v58, 0.0 }
 0x714   : > { %1631 = vadd.xlane.f32.xlu0 %v1630_v59 }
 0x720   : > { %1793 = vrot.lane.b32.xlu1 %v3102_v24, %s2776_s10 }
 0x724   : > { %1869 = vrot.lane.b32.xlu1 %v3110_v27, %s2776_s10 }
 0x729   : > { %v1623_v60 = vpop.xlane.xlu0 %1622 }
 0x72a   : > { %2510 = vrcp.f32 %v1623_v60  ;;  %1717 = vrot.lane.b32.xlu0 %v3104_v25, %s2776_s10 }
 0x737   : > { %v2511_v61 = vpop.eup %2510 }
 0x738   : > { %v1634_v62 = vmul.f32 %v2511_v61, %v2497_v37 }
 0x73a   : > { %2354 = vmatmul.mubr.msk.f32.vlgmr.msra.gmra.mxu0 %vm556_vm2, %v1634_v62 }
 0x73b   : > { %2363 = vmatprep.mubr.msk.f32.mxu0 %vm2768_vm0, %v2767_v0 }
 0x798   : > { %v1626_v63 = vpop.xlane.xlu1 %1625 }
 0x799   : > { %2512 = vrcp.f32 %v1626_v63  ;;  %v1629_v1 = vpop.xlane.xlu0 %1628 }
 0x79a   : > { %2514 = vrcp.f32 %v1629_v1 }
 0x79c   : > { %v1794_v2 = vpop.permute.xlu1 %1793 }
 0x79d   : > { %v1632_v3 = vpop.xlane.xlu0 %1631  ;;  %2362 = vmatpush3.msra.mxu0 %v1794_v2 }
 0x79e   : > { %2516 = vrcp.f32 %v1632_v3 }
 0x7a0   : > { %v1870_v9 = vpop.permute.xlu1 %1869 }
 0x7a1   : > { %v1718_v4 = vpop.permute.xlu0 %1717 }
 0x7a2   : > { %2357 = vmatpush3.msra.mxu1 %v1718_v4 }
 0x7a3   : > { %2366 = vmatprep.subr.mxu1 %v2767_v0 }
 0x7a6   : > { %v2513_v5 = vpop.eup %2512 }
 0x7a7   : > { %v2515_v6 = vpop.eup %2514  ;;  %v1636_v7 = vmul.f32 %v2513_v5, %v2505_v54 }
 0x7a8   : > { %v1638_v8 = vmul.f32 %v2515_v6, %v2507_v55 }
 0x7a9   : > { %1960 = vrot.lane.b32.xlu1 %v1636_v7, %s2773_s22  ;;  %2359 = vmatmul.mubr.msk.f32.vlgmr.msra.gmra.mxu1 %vm556_vm2, %v1636_v7 }
 0x7aa   : > { %2364 = vmatmul.mubr.msk.f32.vlgmr.msra.gmra.mxu0 %vm556_vm2, %v1638_v8  ;;  %2367 = vmatpush3.msra.mxu1 %v1870_v9 }
 0x7ab   : > { %v2517_v10 = vpop.eup %2516  ;;  %2368 = vmatprep.mubr.msk.f32.mxu1 %vm2768_vm0, %v2767_v0 }
 0x7ac   : > { %v1640_v11 = vmul.f32 %v2517_v10, %v2509_v58 }
 0x7ad   : > { %1963 = vrot.lane.b32.xlu1 %v1638_v8, %s2774_s13 }
 0x7ae   : > { %2369 = vmatmul.mubr.msk.f32.vlgmr.msra.gmra.mxu1 %vm556_vm2, %v1640_v11 }
 0x7b1   : > { %1966 = vrot.lane.b32.xlu1 %v1640_v11, %s2775_s2 }
 0x7fa   : > { %v1713_v12 = vpop.f32.mrf.mxu0 }
 0x7fc   : > { %v2355_v13 = vpop.f32.mrf.mxu0 }
 0x81b   : > { %v1961_v14 = vpop.permute.xlu1 %1960 }
 0x81c   : > { %v1969_v16 = vsel %vm556_vm2, %v1634_v62, %v1961_v14 }
 0x81f   : > { %v1964_v15 = vpop.permute.xlu1 %1963 }
 0x820   : > { %v1970_v17 = vsel %vm1206_vm3, %v1969_v16, %v1964_v15 }
 0x823   : > { %v1967_v18 = vpop.permute.xlu1 %1966 }
 0x824   : > { %v1971_v0 = vsel %vm1208_vm4, %v1970_v17, %v1967_v18 }
 0x825   : > { %1973 = vst.msk [vmem:[%s384_s18] sm:$0xff] %vm390_vm1, %v1971_v0 }
 0x869   : > { %v1789_v19 = vpop.f32.mrf.mxu1 }
 0x86a   : > { %v1865_v20 = vpop.f32.mrf.mxu0  ;;  %1946 = vrot.lane.b32.xlu0 %v1789_v19, %s2773_s22 }
 0x86b   : > { %v2360_v21 = vpop.f32.mrf.mxu1 }
 0x86c   : > { %2665 = shalt.err (!%p2662_p8)
}
 0x86d   : > { %s2666_s22 = scalar_lea.hbm %s3172_s11, 128  ;;  %s2670_s18 = scalar_lea.hbm %s3248_s7, 256 }
 0x86e   : > { %p2667_p10 = scmp.ne.s32.totalorder %s3172_s11, %s2666_s22  ;;  %p2671_p2 = scmp.lt.s32.totalorder %s3172_s11, %s3248_s7 }
 0x86f   : > { %p2672_p4 = scmp.lt.s32.totalorder %s2670_s18, %s2666_s22 }
 0x870   : > { %p2668_p1 = pnand %p2667_p10, %p3273_p0 }
 0x871   : > { %p2673_p6 = por %p2672_p4, %p2671_p2 }
 0x872   : > { %p2669_p11 = pneg %p2668_p1 }
 0x874   : > { %p2674_p12 = pnand %p2673_p6, %p2669_p11 }
 0x876   : > { %2677 = shalt.err (!%p2674_p12)
}
 0x877   : > { %2388 = dma.vmem_to_hbm [thread:$0]  (%p3273_p0), %s2007_s12, 128, %s3172_s11, %s1980_s30   ;;  %v2365_v22 = vpop.f32.mrf.mxu0  ;;  %v1941_v23 = vpop.f32.mrf.mxu1  ;;  %1950 = vrot.lane.b32.xlu0 %v1865_v20, %s2774_s13 }
 0x878   : > { %s377_s17 = scalar_lea.vmem [#allocation11], %s2982_s4  ;;  %s3202_s30 = scalar_lea.hbm %s3247_s6, %s2207_s19 }
 0x879   : > { %v2370_v24 = vpop.f32.mrf.mxu1  ;;  %s1993_s15 = sshll.u32 %s377_s17, 4  ;;  %s1975_s13 = scalar_lea.sflag [#allocation4], %s2979_s3  ;;  %s1994_s15 = int_to_ptr.vmem [resolvable:$true] %s1993_s15 }
 0x87a   : > { %s2778_s4 = smov [#allocation11]  }
 0x87b   : > { %1954 = vrot.lane.b32.xlu0 %v1941_v23, %s2775_s2  ;;  %s2678_s2 = scalar_lea.vmem %s1994_s15, 128  ;;  %s2682_s21 = sshll.u32 %s2778_s4, 4  ;;  %s2683_s21 = int_to_ptr.vmem [resolvable:$false] %s2682_s21 }
 0x87c   : > { %p2679_p5 = scmp.ne.s32.totalorder %s1994_s15, %s2678_s2  ;;  %s2684_s28 = scalar_lea.vmem %s2683_s21, 256 }
 0x87d   : > { %p2685_p9 = scmp.lt.s32.totalorder %s1994_s15, %s2683_s21  ;;  %p2686_p13 = scmp.lt.s32.totalorder %s2684_s28, %s2678_s2 }
 0x87e   : > { %p2680_p3 = pnand %p2679_p5, %p3273_p0 }
 0x87f   : > { %p2687_p8 = por %p2686_p13, %p2685_p9 }
 0x880   : > { %p2681_p7 = pneg %p2680_p3 }
 0x882   : > { %p2688_p10 = pnand %p2687_p8, %p2681_p7 }
 0x8dc   : > { %v1947_v25 = vpop.permute.xlu0 %1946 }
 0x8dd   : > { %v1957_v27 = vsel %vm556_vm2, %v1713_v12, %v1947_v25 }
 0x8e9   : > { %v1951_v26 = vpop.permute.xlu0 %1950 }
 0x8ea   : > { %v1958_v28 = vsel %vm1206_vm3, %v1957_v27, %v1951_v26 }
 0x8ed   : > { %v1955_v29 = vpop.permute.xlu0 %1954 }
 0x8ee   : > { %v1959_v30 = vsel %vm1208_vm4, %v1958_v28, %v1955_v29 }
 0x8ef   : > { %1972 = vst.msk [vmem:[%s377_s17] sm:$0xff] %vm390_vm1, %v1959_v30 }
 0x8f0   : > { %2691 = shalt.err (!%p2688_p10)
}
 0x8f1   : > { %s2692_s19 = scalar_lea.hbm %s3202_s30, 128  ;;  %s2696_s22 = scalar_lea.hbm %s3247_s6, 256 }
 0x8f2   : > { %p2693_p1 = scmp.ne.s32.totalorder %s3202_s30, %s2692_s19  ;;  %p2697_p4 = scmp.lt.s32.totalorder %s3202_s30, %s3247_s6 }
 0x8f3   : > { %p2698_p6 = scmp.lt.s32.totalorder %s2696_s22, %s2692_s19 }
 0x8f4   : > { %p2694_p11 = pnand %p2693_p1, %p3273_p0 }
 0x8f5   : > { %p2699_p12 = por %p2698_p6, %p2697_p4 }
 0x8f6   : > { %p2695_p2 = pneg %p2694_p11 }
 0x8f8   : > { %p2700_p5 = pnand %p2699_p12, %p2695_p2 }
 0x8fa   : > { %2703 = shalt.err (!%p2700_p5)
}
 0x8fb   : > { %2387 = dma.vmem_to_hbm [thread:$0]  (%p3273_p0), %s1994_s15, 128, %s3202_s30, %s1975_s13  }
 0x8fc PF: > { %s2018_s18 = sand.u32 1, %s2746_s24   ;;  %p3274_p3 = scmp.ne.s32.totalorder %s3257_s8, 0 }
 0x8fd   : > { %p3275_p7 = scmp.ge.s32.totalorder %s2758_s27, 2  ;;  %s2019_s29 = scalar_lea.sflag [#allocation4], %s2018_s18 }
 0x8ff   : > { %p2409_p9 = pnand %p3275_p7, %p3274_p3 }
 0x901   : > { %p2410_p13 = pneg %p2409_p9 }
 0x903   : > { %2737 = dma.done.wait (%p2410_p13), %s2019_s29, 128  }
 0x904   : > { %2739 = vsyncadd (%p2410_p13), %s2019_s29, 4294967168  ;;  %s2028_s9 = scalar_lea.sflag [#allocation13], %s2018_s18 }
 0x905   : > { %2741 = dma.done.wait (%p2410_p13), %s2028_s9, 128  }
 0x906   : > { %2743 = vsyncadd (%p2410_p13), %s2028_s9, 4294967168  ;;  %s3276_s20 = sld [smem:[#allocation20_spill]]  ;;  %p28_p0 = scmp.ge.s32.totalorder %s2899_s14, 4  }
 0x907   : > { %s3277_s24 = smov %s2750_s25  ;;  %s3278_s25 = smov %s2754_s26 }
 0x908   : > { %s3280_s27 = smov %s2899_s14  ;;  %30 = sbr.rel (!%p28_p0) target bundleno = 14 (0xe), region = 131 }
 0x90c   : > { %s3279_s26 = smov %s3276_s20 }
 0x90d   :  { %2033 = vsyncpa [#allocation3], 1 }
 0x90e   :  { %2035 = vsyncpa [#allocation3 + $0x1], 1 }
 0x90f   :  { %2036 = vsyncpa [#allocation6], 1 }
 0x910   :  { %2038 = vsyncpa [#allocation6 + $0x1], 1 }
 0x911   :  { %2039 = vsyncpa [#allocation9], 1 }
 0x912   :  { %2040 = vsyncpa [#allocation4], 1 }
 0x913   :  { %2042 = vsyncpa [#allocation4 + $0x1], 1 }
 0x914   :  { %2043 = vsyncpa [#allocation13], 1 }
 0x915   :  { %2045 = vsyncpa [#allocation13 + $0x1], 1 }

</bundles_post_ra>
